<compile_context>
chip_gen: v5e
topology: v5e:2x2
jax: 0.10.0
libtpu: 0.0.40
codegen_flags: <defaults>
</compile_context>

<pallas_src>
import functools

import jax
import jax.numpy as jnp
from jax.experimental import pallas as pl
from jax.experimental.pallas import tpu as pltpu


def _focal_kernel(nvalid_ref, preds_ref, labels_ref, alpha_ref, out_ref, *,
                  gamma, row_tile):
    x = preds_ref[...].astype(jnp.float32)                  # (TM, C) f32
    labels = labels_ref[...]                                 # (TM, 1) int32
    alpha = alpha_ref[...].astype(jnp.float32)               # (1, C)

    # log_softmax "gather" without materializing the full (TM, C) logsoft.
    m = jnp.max(x, axis=-1, keepdims=True)                   # (TM, 1)
    z = x - m                                                 # (TM, C)
    lse = jnp.log(jnp.sum(jnp.exp(z), axis=-1, keepdims=True))  # (TM, 1)

    col = jax.lax.broadcasted_iota(jnp.int32, x.shape, 1)
    hit = col == labels                                       # (TM, C) bool

    z_lab = jnp.sum(jnp.where(hit, z, 0.0), axis=-1, keepdims=True)   # (TM, 1)
    logp = z_lab - lse                                        # (TM, 1)
    p = jnp.exp(logp)                                         # (TM, 1)

    alpha_row = jnp.sum(jnp.where(hit, alpha, 0.0), axis=-1, keepdims=True)

    # Focal term: clamp the base (exp(logp) can exceed 1 by an ulp); integral
    # gamma lowers to repeated VPU multiplies instead of EUP pow.
    base = jnp.maximum(1.0 - p, 0.0)
    if float(gamma) == int(gamma):
        focal = jax.lax.integer_pow(base, int(gamma))
    else:
        focal = jnp.power(base, jnp.float32(gamma))

    loss = -focal * logp * alpha_row                          # (TM, 1)

    # Per-tile partial sum written as an (8,128)-aligned slab: the scalar at
    # [0, 0], zeros elsewhere -> unmasked full-vreg store, tiny writeback DMA.
    def _store(vals):
        s = jnp.sum(vals)
        r = jax.lax.broadcasted_iota(jnp.int32, (1, 8, 128), 1)
        c = jax.lax.broadcasted_iota(jnp.int32, (1, 8, 128), 2)
        out_ref[...] = jnp.where((r == 0) & (c == 0), s, jnp.float32(0.0))

    i = pl.program_id(0)
    is_last = i == pl.num_programs(0) - 1

    # Interior tiles never contain out-of-range rows: skip the mask there.
    @pl.when(jnp.logical_not(is_last))
    def _():
        _store(loss)

    # Last (possibly partial) tile: select-zero rows >= n_valid so garbage in
    # the padded tail of the block (NaN/Inf included) cannot leak.
    @pl.when(is_last)
    def _():
        row = (jax.lax.broadcasted_iota(jnp.int32, loss.shape, 0)
               + i * row_tile)
        _store(jnp.where(row < nvalid_ref[0], loss, 0.0))


def _round_up(x, m):
    return (x + m - 1) // m * m


def _vmem_limit_bytes():
    """Generation-conditional scoped-VMEM limit with headroom below physical."""
    phys = 64 * 1024 * 1024           # conservative default: v7x per-TC VMEM
    try:
        info = pltpu.get_tpu_info()
        cap = getattr(info, "vmem_capacity_bytes", None)
        if cap:
            phys = int(cap)
    except Exception:
        pass
    # 3/4 of physical, capped at 96 MiB on 128 MiB parts (v5e/v6e).
    return min((phys * 3) // 4, 96 * 1024 * 1024)


def focal_loss_pallas(preds, labels, alpha, *, gamma=2, size_average=False,
                      max_row_tile=32768):
    """Pallas implementation of MeshTransformer focal_loss.forward.

    preds:  (..., C) float array (f32 or bf16); flattened to (N, C) and
            streamed in its input dtype.
    labels: (...) int array with values in [0, C).
    alpha:  (C,) float per-class weights.
    """
    # TODO(synk): optional `weight` argument of the reference forward (default
    # None) is not implemented.
    num_classes = preds.shape[-1]
    preds2d = preds.reshape(-1, num_classes)                 # (N, C), keep dtype
    labels2d = labels.reshape(-1, 1).astype(jnp.int32)       # (N, 1)
    alpha2d = jnp.asarray(alpha, jnp.float32).reshape(1, num_classes)

    n_rows = preds2d.shape[0]

    # Byte-targeted tile sizing. Per-row VMEM estimate:
    #   double-buffered preds stream (2 * C * itemsize)
    # + ~4 full-width f32 temporaries inside the kernel (x upcast, z, exp(z),
    #   select results)  (4 * C * 4)
    # + labels (double-buffered int32).
    vmem_limit = _vmem_limit_bytes()
    itemsize = preds2d.dtype.itemsize
    per_row_bytes = num_classes * (2 * itemsize + 4 * 4) + 2 * 4
    budget = (vmem_limit * 6) // 10          # leave headroom for output/misc
    row_tile = budget // per_row_bytes
    row_tile = min(row_tile, max_row_tile, _round_up(n_rows, 8))
    row_tile = max(8, (row_tile // 8) * 8)

    # No padding of preds/labels: grid tolerates a partial last block; garbage
    # tail rows are select-zeroed in-kernel via the n_valid prefetch scalar.
    n_tiles = pl.cdiv(n_rows, row_tile)
    n_valid = jnp.array([n_rows], dtype=jnp.int32)

    per_tile = pl.pallas_call(
        functools.partial(_focal_kernel, gamma=gamma, row_tile=row_tile),
        out_shape=jax.ShapeDtypeStruct((n_tiles, 8, 128), jnp.float32),
        grid_spec=pltpu.PrefetchScalarGridSpec(
            num_scalar_prefetch=1,
            grid=(n_tiles,),
            in_specs=[
                pl.BlockSpec((row_tile, num_classes), lambda i, nv: (i, 0)),
                pl.BlockSpec((row_tile, 1), lambda i, nv: (i, 0)),
                pl.BlockSpec((1, num_classes), lambda i, nv: (0, 0)),
            ],
            out_specs=pl.BlockSpec((1, 8, 128), lambda i, nv: (i, 0, 0)),
        ),
        compiler_params=pltpu.CompilerParams(
            dimension_semantics=("parallel",),
            vmem_limit_bytes=int(vmem_limit),
        ),
    )(n_valid, preds2d, labels2d, alpha2d)

    # Only [:, 0, 0] of each slab is nonzero; summing the whole (tiny) array
    # in plain XLA keeps the kernel free of cross-tile accumulation.
    total = jnp.sum(per_tile)
    if size_average:
        total = total / jnp.float32(n_rows)
    return total


def focal_loss_ref(preds, labels, alpha, *, gamma=2, size_average=False):
    """Pure-JAX reference mirroring the torch module."""
    num_classes = preds.shape[-1]
    p = preds.reshape(-1, num_classes).astype(jnp.float32)
    l = labels.reshape(-1)
    logsoft = jax.nn.log_softmax(p, axis=1)
    logp = jnp.take_along_axis(logsoft, l[:, None], axis=1)[:, 0]
    prob = jnp.exp(logp)
    a = jnp.asarray(alpha, jnp.float32)[l]
    loss = -jnp.power(1.0 - prob, gamma) * logp * a
    return jnp.mean(loss) if size_average else jnp.sum(loss)


if __name__ == "__main__":
    key = jax.random.PRNGKey(0)
    batch, seq, num_classes = 2, 8, 32          # N = 16 rows after flatten

    k1, k2, k3, k4, k5, k6 = jax.random.split(key, 6)
    preds = jax.random.normal(k1, (batch, seq, num_classes), dtype=jnp.float32)
    labels = jax.random.randint(k2, (batch, seq), 0, num_classes, dtype=jnp.int32)
    alpha = jnp.linspace(0.25, 0.75, num_classes, dtype=jnp.float32)

    # 1) f32 logits, sum reduction (module default size_average=False).
    out = jax.block_until_ready(
        focal_loss_pallas(preds, labels, alpha, gamma=2, size_average=False))
    ref = focal_loss_ref(preds, labels, alpha, gamma=2, size_average=False)
    assert jnp.allclose(out, ref, rtol=1e-5, atol=1e-5), (out, ref)

    # 2) bf16 logits streamed directly (halved HBM bytes), vs f32 reference on
    #    the same rounded values.
    preds_bf16 = preds.astype(jnp.bfloat16)
    out_bf16 = jax.block_until_ready(
        focal_loss_pallas(preds_bf16, labels, alpha, gamma=2))
    ref_bf16 = focal_loss_ref(preds_bf16.astype(jnp.float32), labels, alpha, gamma=2)
    assert jnp.allclose(out_bf16, ref_bf16, rtol=1e-4, atol=1e-4), (out_bf16, ref_bf16)

    # 3) Ragged N (15 rows, single partial block) + size_average=True.
    preds_r = jax.random.normal(k3, (3, 5, num_classes), dtype=jnp.float32)
    labels_r = jax.random.randint(k4, (3, 5), 0, num_classes, dtype=jnp.int32)
    out_r = jax.block_until_ready(
        focal_loss_pallas(preds_r, labels_r, alpha, gamma=2, size_average=True))
    ref_r = focal_loss_ref(preds_r, labels_r, alpha, gamma=2, size_average=True)
    assert jnp.allclose(out_r, ref_r, rtol=1e-5, atol=1e-5), (out_r, ref_r)

    # 4) Multi-tile grid with a non-divisible N (250 rows, forced row_tile=64
    #    -> 4 tiles, partial last block) exercising the per-tile partial-sum
    #    output and last-tile-only masking.
    preds_m = jax.random.normal(k5, (250, num_classes), dtype=jnp.float32)
    labels_m = jax.random.randint(k6, (250,), 0, num_classes, dtype=jnp.int32)
    out_m = jax.block_until_ready(
        focal_loss_pallas(preds_m, labels_m, alpha, gamma=2, max_row_tile=64))
    ref_m = focal_loss_ref(preds_m, labels_m, alpha, gamma=2)
    assert jnp.allclose(out_m, ref_m, rtol=1e-5, atol=1e-5), (out_m, ref_m)

    print("KERNEL_OK")
</pallas_src>

<mosaic_0001>
module attributes {stable_mosaic.version = 11 : i64} {
  func.func @_focal_kernel(%arg0: i32, %arg1: memref<1xi32, #tpu.memory_space<smem>>, %arg2: memref<16x32xf32, #tpu.memory_space<vmem>>, %arg3: memref<16x1xi32, #tpu.memory_space<vmem>>, %arg4: memref<1x32xf32, #tpu.memory_space<vmem>>, %arg5: memref<1x8x128xf32, #tpu.memory_space<vmem>>) attributes {dimension_semantics = [#tpu.dimension_semantics<parallel>], iteration_bounds = array<i64: 1>, scalar_prefetch = 1 : i64, scratch_operands = 0 : i64, tpu.core_type = #tpu.core_type<tc>, window_params = [{transform_indices = @transform_0, window_bounds = array<i64: 16, 32>}, {transform_indices = @transform_1, window_bounds = array<i64: 16, 1>}, {pipeline_mode = #tpu.pipeline_mode<synchronous>, transform_indices = @transform_2, window_bounds = array<i64: 1, 32>}, {transform_indices = @transform_3, window_bounds = array<i64: 1, 8, 128>}]} {
    %c0 = arith.constant 0 : index
    %c0_0 = arith.constant 0 : index
    %0 = vector.load %arg2[%c0, %c0_0] : memref<16x32xf32, #tpu.memory_space<vmem>>, vector<16x32xf32>
    %c0_1 = arith.constant 0 : index
    %c0_2 = arith.constant 0 : index
    %1 = vector.load %arg3[%c0_1, %c0_2] : memref<16x1xi32, #tpu.memory_space<vmem>>, vector<16x1xi32>
    %c0_3 = arith.constant 0 : index
    %c0_4 = arith.constant 0 : index
    %2 = vector.load %arg4[%c0_3, %c0_4] : memref<1x32xf32, #tpu.memory_space<vmem>>, vector<1x32xf32>
    %cst = arith.constant dense<0xFF800000> : vector<16xf32>
    %3 = vector.multi_reduction <maximumf>, %0, %cst [1] : vector<16x32xf32> to vector<16xf32>
    %4 = vector.shape_cast %3 : vector<16xf32> to vector<16x1xf32>
    %5 = vector.broadcast %4 : vector<16x1xf32> to vector<16x32xf32>
    %6 = arith.subf %0, %5 : vector<16x32xf32>
    %7 = math.exp %6 : vector<16x32xf32>
    %cst_5 = arith.constant dense<0.000000e+00> : vector<16xf32>
    %8 = vector.multi_reduction <add>, %7, %cst_5 [1] : vector<16x32xf32> to vector<16xf32>
    %9 = vector.shape_cast %8 : vector<16xf32> to vector<16x1xf32>
    %10 = math.log %9 : vector<16x1xf32>
    %11 = tpu.iota {dimensions = array<i32: 1>} : vector<16x32xi32>
    %12 = vector.broadcast %1 : vector<16x1xi32> to vector<16x32xi32>
    %13 = arith.cmpi eq, %11, %12 : vector<16x32xi32>
    %cst_6 = arith.constant 0.000000e+00 : f32
    %14 = vector.broadcast %cst_6 : f32 to vector<16x32xf32>
    %15 = arith.select %13, %6, %14 : vector<16x32xi1>, vector<16x32xf32>
    %cst_7 = arith.constant dense<0.000000e+00> : vector<16xf32>
    %16 = vector.multi_reduction <add>, %15, %cst_7 [1] : vector<16x32xf32> to vector<16xf32>
    %17 = vector.shape_cast %16 : vector<16xf32> to vector<16x1xf32>
    %18 = arith.subf %17, %10 : vector<16x1xf32>
    %19 = math.exp %18 : vector<16x1xf32>
    %cst_8 = arith.constant 0.000000e+00 : f32
    %20 = vector.shape_cast %2 : vector<1x32xf32> to vector<1x32xf32>
    %21 = vector.broadcast %20 : vector<1x32xf32> to vector<16x32xf32>
    %22 = vector.broadcast %cst_8 : f32 to vector<16x32xf32>
    %23 = arith.select %13, %21, %22 : vector<16x32xi1>, vector<16x32xf32>
    %cst_9 = arith.constant dense<0.000000e+00> : vector<16xf32>
    %24 = vector.multi_reduction <add>, %23, %cst_9 [1] : vector<16x32xf32> to vector<16xf32>
    %25 = vector.shape_cast %24 : vector<16xf32> to vector<16x1xf32>
    %cst_10 = arith.constant 1.000000e+00 : f32
    %26 = vector.broadcast %cst_10 : f32 to vector<16x1xf32>
    %27 = arith.subf %26, %19 : vector<16x1xf32>
    %cst_11 = arith.constant 0.000000e+00 : f32
    %28 = vector.broadcast %cst_11 : f32 to vector<16x1xf32>
    %29 = arith.maximumf %27, %28 : vector<16x1xf32>
    %30 = arith.mulf %29, %29 : vector<16x1xf32>
    %cst_12 = arith.constant 0.000000e+00 : f32
    %31 = vector.broadcast %cst_12 : f32 to vector<16x1xf32>
    %32 = arith.subf %31, %30 : vector<16x1xf32>
    %33 = arith.mulf %32, %18 : vector<16x1xf32>
    %34 = arith.mulf %33, %25 : vector<16x1xf32>
    %c0_i32 = arith.constant 0 : i32
    %35 = arith.cmpi eq, %arg0, %c0_i32 : i32
    %true = arith.constant true
    %36 = arith.xori %35, %true : i1
    %37 = arith.extui %36 : i1 to i32
    %c0_i32_13 = arith.constant 0 : i32
    %38 = arith.cmpi ne, %37, %c0_i32_13 : i32
    scf.if %38 {
      %41 = vector.shape_cast %34 : vector<16x1xf32> to vector<1x16x1xf32>
      %cst_15 = arith.constant dense<0.000000e+00> : vector<1xf32>
      %42 = vector.multi_reduction <add>, %41, %cst_15 [1, 2] : vector<1x16x1xf32> to vector<1xf32>
      %43 = vector.shape_cast %42 : vector<1xf32> to vector<1x1x1xf32>
      %44 = vector.extract %43[0, 0, 0] : f32 from vector<1x1x1xf32>
      %45 = tpu.iota {dimensions = array<i32: 1>} : vector<1x8x128xi32>
      %46 = tpu.iota {dimensions = array<i32: 2>} : vector<1x8x128xi32>
      %c0_i32_16 = arith.constant 0 : i32
      %47 = vector.broadcast %c0_i32_16 : i32 to vector<1x8x128xi32>
      %48 = arith.cmpi eq, %45, %47 : vector<1x8x128xi32>
      %c0_i32_17 = arith.constant 0 : i32
      %49 = vector.broadcast %c0_i32_17 : i32 to vector<1x8x128xi32>
      %50 = arith.cmpi eq, %46, %49 : vector<1x8x128xi32>
      %51 = arith.andi %48, %50 : vector<1x8x128xi1>
      %cst_18 = arith.constant 0.000000e+00 : f32
      %52 = vector.broadcast %44 : f32 to vector<1x8x128xf32>
      %53 = vector.broadcast %cst_18 : f32 to vector<1x8x128xf32>
      %54 = arith.select %51, %52, %53 : vector<1x8x128xi1>, vector<1x8x128xf32>
      %c0_19 = arith.constant 0 : index
      %c0_20 = arith.constant 0 : index
      %c0_21 = arith.constant 0 : index
      %55 = vector.load %arg5[%c0_19, %c0_20, %c0_21] : memref<1x8x128xf32, #tpu.memory_space<vmem>>, vector<1x8x128xf32>
      tpu.vector_store %arg5[%c0_19, %c0_20, %c0_21], %54 {strides = array<i32>} : memref<1x8x128xf32, #tpu.memory_space<vmem>>, vector<1x8x128xf32>,
    } else {
    }
    %39 = arith.extui %35 : i1 to i32
    %c0_i32_14 = arith.constant 0 : i32
    %40 = arith.cmpi ne, %39, %c0_i32_14 : i32
    scf.if %40 {
      %41 = tpu.iota {dimensions = array<i32: 0>} : vector<16x1xi32>
      %c16_i32 = arith.constant 16 : i32
      %42 = arith.muli %arg0, %c16_i32 : i32
      %43 = vector.broadcast %42 : i32 to vector<16x1xi32>
      %44 = arith.addi %41, %43 : vector<16x1xi32>
      %c0_15 = arith.constant 0 : index
      %45 = memref.load %arg1[%c0_15] : memref<1xi32, #tpu.memory_space<smem>>
      %46 = vector.broadcast %45 : i32 to vector<16x1xi32>
      %47 = arith.cmpi slt, %44, %46 : vector<16x1xi32>
      %cst_16 = arith.constant 0.000000e+00 : f32
      %48 = vector.broadcast %cst_16 : f32 to vector<16x1xf32>
      %49 = arith.select %47, %34, %48 : vector<16x1xi1>, vector<16x1xf32>
      %50 = vector.shape_cast %49 : vector<16x1xf32> to vector<1x16x1xf32>
      %cst_17 = arith.constant dense<0.000000e+00> : vector<1xf32>
      %51 = vector.multi_reduction <add>, %50, %cst_17 [1, 2] : vector<1x16x1xf32> to vector<1xf32>
      %52 = vector.shape_cast %51 : vector<1xf32> to vector<1x1x1xf32>
      %53 = vector.extract %52[0, 0, 0] : f32 from vector<1x1x1xf32>
      %54 = tpu.iota {dimensions = array<i32: 1>} : vector<1x8x128xi32>
      %55 = tpu.iota {dimensions = array<i32: 2>} : vector<1x8x128xi32>
      %c0_i32_18 = arith.constant 0 : i32
      %56 = vector.broadcast %c0_i32_18 : i32 to vector<1x8x128xi32>
      %57 = arith.cmpi eq, %54, %56 : vector<1x8x128xi32>
      %c0_i32_19 = arith.constant 0 : i32
      %58 = vector.broadcast %c0_i32_19 : i32 to vector<1x8x128xi32>
      %59 = arith.cmpi eq, %55, %58 : vector<1x8x128xi32>
      %60 = arith.andi %57, %59 : vector<1x8x128xi1>
      %cst_20 = arith.constant 0.000000e+00 : f32
      %61 = vector.broadcast %53 : f32 to vector<1x8x128xf32>
      %62 = vector.broadcast %cst_20 : f32 to vector<1x8x128xf32>
      %63 = arith.select %60, %61, %62 : vector<1x8x128xi1>, vector<1x8x128xf32>
      %c0_21 = arith.constant 0 : index
      %c0_22 = arith.constant 0 : index
      %c0_23 = arith.constant 0 : index
      %64 = vector.load %arg5[%c0_21, %c0_22, %c0_23] : memref<1x8x128xf32, #tpu.memory_space<vmem>>, vector<1x8x128xf32>
      tpu.vector_store %arg5[%c0_21, %c0_22, %c0_23], %63 {strides = array<i32>} : memref<1x8x128xf32, #tpu.memory_space<vmem>>, vector<1x8x128xf32>,
    } else {
    }
    return
  }
  func.func @transform_0(%arg0: i32, %arg1: memref<1xi32, #tpu.memory_space<smem>>) -> (i32, i32) {
    %c0_i32 = arith.constant 0 : i32
    %c0_i32_0 = arith.constant 0 : i32
    return %arg0, %c0_i32 : i32, i32
  }
  func.func @transform_1(%arg0: i32, %arg1: memref<1xi32, #tpu.memory_space<smem>>) -> (i32, i32) {
    %c0_i32 = arith.constant 0 : i32
    %c0_i32_0 = arith.constant 0 : i32
    return %arg0, %c0_i32 : i32, i32
  }
  func.func @transform_2(%arg0: i32, %arg1: memref<1xi32, #tpu.memory_space<smem>>) -> (i32, i32) {
    %c0_i32 = arith.constant 0 : i32
    %c0_i32_0 = arith.constant 0 : i32
    %c0_i32_1 = arith.constant 0 : i32
    return %c0_i32, %c0_i32_0 : i32, i32
  }
  func.func @transform_3(%arg0: i32, %arg1: memref<1xi32, #tpu.memory_space<smem>>) -> (i32, i32, i32) {
    %c0_i32 = arith.constant 0 : i32
    %c0_i32_0 = arith.constant 0 : i32
    %c0_i32_1 = arith.constant 0 : i32
    return %arg0, %c0_i32, %c0_i32_0 : i32, i32, i32
  }
}

</mosaic_0001>

<bundles_post_ra>
// kernel: tpu_custom_call.1
= control target key start
LH: loop header
LB: loop body
LE: loop exit
PB: predicated region body
PF: predicated region fallthrough
CT: control target
= control target key end

     0   :  { %vm22_vm0 = vcmask 261120   ;;  %v214_v3 = vmov 0   ;;  %s279_s0 = inlined_call_operand.<no memory space> [shape: s32[1], index: 0, kind: input, shape index: {}]   ;;  %s280_s1 = inlined_call_operand.vmem [shape: f32[16,32], index: 1, kind: input, shape index: {}]   ;;  %s281_s2 = inlined_call_operand.vmem [shape: s32[16,1], index: 2, kind: input, shape index: {}]   ;;  %s282_s3 = inlined_call_operand.vmem [shape: f32[1,32], index: 3, kind: input, shape index: {}]   ;;  %s283_s4 = inlined_call_operand.hbm [shape: f32[1,8,128], index: 4, kind: output, shape index: {}]  }
   0x1   :  { %v17_v0 = vld [vmem:[%s280_s1] sm:$0xff]  ;;  %173 = vset.pattern.permute.xlu1 %v214_v3  ;;  %174 = vset.pattern.permute.xlu0 %v214_v3 }
   0x2   :  { %v19_v1 = vld [vmem:[%s281_s2] sm:$0xff]  ;;  %v23_v2 = vsel %vm22_vm0, %v17_v0, -inf }
   0x3   :  { %24 = vmax.xlane.f32.xlu0 %v23_v2  ;;  %48 = vperm.xlu1 %173, %v19_v1  }
   0x4   :  { %10 = vsyncpa [#allocation5], 0  ;;  %v18_v4 = vld [vmem:[%s280_s1 + $0x8] sm:$0xff]  ;;  %v45_v7 = vlaneseq  ;;  %v175_v15 = vld [vmem:[%s282_s3] ss:$0 sm:$0xff]  ;;  %v129_v53 = vstv %s279_s0  ;;  %vm134_vm5 = vcmask 7168  }
   0x5   :  { %v26_v5 = vsel %vm22_vm0, %v18_v4, -inf  ;;  %v20_v6 = vld [vmem:[%s281_s2 + $0x8] sm:$0xff]  ;;  %s215_s0 = smov [#allocation4]   ;;  %s160_s27 = sshll.u32 %s283_s4, 4  ;;  %s161_s27 = int_to_ptr.hbm [resolvable:$true] %s160_s27 }
   0x6   :  { %v255_v8 = vand.u32 127, %v45_v7  ;;  %v122_v51 = vshrl.u32 %v45_v7, 7  ;;  %s158_s24 = sshll.u32 %s215_s0, 4  ;;  %s159_s24 = int_to_ptr.vmem [resolvable:$true] %s158_s24 }
   0x8   :  { %v123_v54 = vadd.s32 8, %v122_v51  ;;  %vm130_vm3 = vcmp.lt.s32.totalorder %v122_v51, %v129_v53  ;;  %vm147_vm6 = vcmp.eq.s32.totalorder %v122_v51, 0  ;;  %vm148_vm7 = vcmp.eq.s32.totalorder %v255_v8, 0 }
   0x9   :  { %vm149_vm8 = vmand %vm147_vm6, %vm148_vm7 }
   0xa   :  { %vm131_vm4 = vcmp.lt.s32.totalorder %v123_v54, %v129_v53 }
   0xb   :  { %27 = vmax.xlane.f32.xlu0 %v26_v5  ;;  %51 = vperm.xlu1 %173, %v20_v6  }
  0x75   :  { %v49_v9 = vpop.permute.xlu1 %48 }
  0x76   :  { %v25_v10 = vpop.xlane.xlu0 %24  ;;  %vm53_vm1 = vcmp.eq.s32.totalorder %v255_v8, %v49_v9 }
  0x77   :  { %v29_v11 = vsub.f32 %v17_v0, %v25_v10  ;;  %v72_v28 = vsel %vm53_vm1, %v175_v15, 0.0 }
  0x78   :  { %v74_v29 = vsel %vm22_vm0, %v72_v28, 0.0 }
  0x79   :  { %v31_v12 = vmul.f32 1.442695, %v29_v11  ;;  %v55_v13 = vsel %vm53_vm1, %v29_v11, 0.0 }
  0x7a   :  { %v57_v14 = vsel %vm22_vm0, %v55_v13, 0.0 }
  0x7b   :  { %176 = vpow2.f32 %v31_v12  ;;  %58 = vadd.xlane.f32.xlu0 %v57_v14 }
  0x7d   :  { %v52_v16 = vpop.permute.xlu1 %51 }
  0x7e   :  { %v28_v17 = vpop.xlane.xlu0 %27  ;;  %vm54_vm2 = vcmp.eq.s32.totalorder %v255_v8, %v52_v16 }
  0x7f   :  { %v30_v18 = vsub.f32 %v18_v4, %v28_v17  ;;  %v73_v19 = vsel %vm54_vm2, %v175_v15, 0.0 }
  0x80   :  { %v77_v23 = vsel %vm22_vm0, %v73_v19, 0.0 }
  0x81   :  { %v177_v20 = vpop.eup %176  ;;  %v33_v21 = vmul.f32 1.442695, %v30_v18  ;;  %v56_v22 = vsel %vm54_vm2, %v30_v18, 0.0 }
  0x82   :  { %v35_v24 = vsel %vm22_vm0, %v177_v20, 0.0  ;;  %v60_v25 = vsel %vm22_vm0, %v56_v22, 0.0 }
  0x83   :  { %178 = vpow2.f32 %v33_v21  ;;  %36 = vadd.xlane.f32.xlu2 %v35_v24  ;;  %61 = vadd.xlane.f32.xlu1 %v60_v25 }
  0x84   :  { %78 = vadd.xlane.f32.xlu0 %v77_v23 }
  0x89   :  { %v179_v26 = vpop.eup %178 }
  0x8a   :  { %v38_v27 = vsel %vm22_vm0, %v179_v26, 0.0 }
  0x8b   :  { %39 = vadd.xlane.f32.xlu2 %v38_v27 }
  0x93   :  { %75 = vadd.xlane.f32.xlu2 %v74_v29 }
  0xee   :  { %v59_v34 = vpop.xlane.xlu0 %58 }
  0xf6   :  { %v37_v30 = vpop.xlane.xlu2 %36  ;;  %v62_v39 = vpop.xlane.xlu1 %61 }
  0xf7   :  { %180 = vlog2.f32 %v37_v30  ;;  %v79_v59 = vpop.xlane.xlu0 %78 }
  0xfd   :  { %v181_v31 = vpop.eup %180 }
  0xfe   :  { %v42_v32 = vmul.f32 0.6931472, %v181_v31  ;;  %v40_v33 = vpop.xlane.xlu2 %39 }
  0xff   :  { %182 = vlog2.f32 %v40_v33 }
 0x100   :  { %v63_v35 = vsub.f32 %v59_v34, %v42_v32 }
 0x102   :  { %v65_v36 = vmul.f32 1.442695, %v63_v35 }
 0x104   :  { %184 = vpow2.f32 %v65_v36 }
 0x105   :  { %v183_v37 = vpop.eup %182 }
 0x106   :  { %v44_v38 = vmul.f32 0.6931472, %v183_v37  ;;  %v76_v55 = vpop.xlane.xlu2 %75 }
 0x108   :  { %v64_v40 = vsub.f32 %v62_v39, %v44_v38 }
 0x10a   :  { %v185_v41 = vpop.eup %184  ;;  %v67_v42 = vmul.f32 1.442695, %v64_v40 }
 0x10b   :  { %v80_v43 = vsub.f32 1.0, %v185_v41 }
 0x10c   :  { %186 = vpow2.f32 %v67_v42 }
 0x10d   :  { %v82_v44 = vmax.f32 %v80_v43, 0.0 }
 0x10f   :  { %v84_v45 = vmul.f32 %v82_v44, %v82_v44 }
 0x111   :  { %v86_v46 = vsub.f32 0.0, %v84_v45 }
 0x112   :  { %v187_v47 = vpop.eup %186 }
 0x113   :  { %v81_v48 = vsub.f32 1.0, %v187_v47  ;;  %v88_v50 = vmul.f32 %v86_v46, %v63_v35 }
 0x115   :  { %v83_v49 = vmax.f32 %v81_v48, 0.0  ;;  %v90_v57 = vmul.f32 %v88_v50, %v76_v55 }
 0x117   :  { %v85_v52 = vmul.f32 %v83_v49, %v83_v49  ;;  %v132_v61 = vsel %vm130_vm3, %v90_v57, 0.0 }
 0x118   :  { %v135_v63 = vsel %vm134_vm5, %v132_v61, 0.0 }
 0x119   :  { %v87_v56 = vsub.f32 0.0, %v85_v52 }
 0x11b   :  { %v89_v58 = vmul.f32 %v87_v56, %v64_v40 }
 0x11d   :  { %v91_v60 = vmul.f32 %v89_v58, %v79_v59 }
 0x11f   :  { %v133_v62 = vsel %vm131_vm4, %v91_v60, 0.0 }
 0x120   :  { %v136_v0 = vsel %vm134_vm5, %v133_v62, 0.0 }
 0x121   :  { %v137_v1 = vadd.f32 %v136_v0, %v135_v63 }
 0x123   :  { %138 = vadd.xlane.f32.xlu2 %v137_v1 }
 0x196   :  { %v139_v2 = vpop.xlane.xlu2 %138 }
 0x197   :  { %v140_v3 = vrot.slane %v139_v2, 4 }
 0x199   :  { %v141_v4 = vadd.f32 %v140_v3, %v139_v2 }
 0x19b   :  { %v142_v5 = vrot.slane %v141_v4, 2 }
 0x19d   :  { %v143_v6 = vadd.f32 %v142_v5, %v141_v4 }
 0x19f   :  { %v144_v7 = vrot.slane %v143_v6, 1 }
 0x1a1   :  { %v145_v9 = vadd.f32 %v144_v7, %v143_v6 }
 0x1a3   :  { %169 = vpush %v145_v9 }
 0x1d4   :  { %s170_s28 = spop %169 }
 0x1d5   :  { %v150_v10 = vstv %s170_s28 }
 0x1d6   :  { %v151_v11 = vsel %vm149_vm8, %v150_v10, 0.0 }
 0x1d7   :  { %152 = vst [vmem:[#allocation4] sm:$0xff] %v151_v11 }
 0x1d8   :  { %163 = dma.vmem_to_hbm [thread:$0]  %s159_s24, 128, %s161_s27, [#allocation5]  }
 0x1d9   :  { %212 = dma.done.wait [#allocation5], 128  }
 0x1da   :  { %213 = vsyncadd [#allocation5], 4294967168 }
 0x1db   :  { %168 = vsyncpa [#allocation5], 1 }

</bundles_post_ra>
